<compile_context>
chip_gen: v5e
topology: v5e:2x2
jax: 0.10.0
libtpu: 0.0.40
codegen_flags: <defaults>
</compile_context>

<pallas_src>
import jax
import jax.numpy as jnp
from jax.experimental import pallas as pl
from jax.experimental.pallas import tpu as pltpu

LANE = 128
SUBLANE = 8


def _round_up(a, b):
    return -(-a // b) * b


def _make_rmse_partial_kernel(block_rows, valid_rows, slab):
    """Build a kernel that writes one (8,128) f32 partial sum of (x-y)^2 per step."""
    need_mask = (valid_rows % block_rows) != 0  # only the last block can be partial
    n_slabs = block_rows // slab

    def kernel(x_ref, y_ref, out_ref):
        block_start = pl.program_id(0) * block_rows

        def body(j, acc):
            r = pl.multiple_of(j * slab, slab)
            # Native-dtype load, f32 cast on the VPU after the DMA.
            xs = x_ref[pl.ds(r, slab), :].astype(jnp.float32)
            ys = y_ref[pl.ds(r, slab), :].astype(jnp.float32)
            d = xs - ys
            if need_mask:
                # Out-of-bounds rows of the partial last block hold undefined
                # data — zero the diff BEFORE squaring so no garbage/NaN leaks.
                row_ids = jax.lax.broadcasted_iota(jnp.int32, (slab, LANE), 0)
                d = jnp.where(block_start + r + row_ids < valid_rows, d, 0.0)
            dd = d * d
            # Fold (slab,128) -> (slab//8, 8, 128) (tile-aligned, free) and add:
            # pure VPU adds into a single-vreg-sized accumulator.
            return acc + jnp.sum(dd.reshape(slab // SUBLANE, SUBLANE, LANE), axis=0)

        acc0 = jnp.zeros((SUBLANE, LANE), jnp.float32)
        out_ref[...] = jax.lax.fori_loop(0, n_slabs, body, acc0)

    return kernel


def rmse_loss(x, y):
    """sqrt(mean((x - y)**2)) over all elements (torch MSELoss + sqrt)."""
    assert x.shape == y.shape, "x and y must have the same shape"
    total = x.size
    assert total > 0, "empty input"

    # ravel is free for contiguous arrays; NO dtype promotion here.
    xf = jnp.ravel(x)
    yf = jnp.ravel(y)

    # The kernel needs a (rows, 128) lane-dense view.  Pad only when forced:
    #  (a) tiny inputs (< 32*128 elems): pad to a multiple of 1024 (negligible),
    #  (b) ragged flat length: pad to the next multiple of 128.
    min_elems = 32 * LANE
    if total < min_elems:
        padded_total = _round_up(total, SUBLANE * LANE)
    elif total % LANE != 0:
        # TODO(synk): rare full-copy pad for flat lengths not divisible by 128;
        # a 1-D BlockSpec path would avoid it but complicates in-kernel layout.
        padded_total = _round_up(total, LANE)
    else:
        padded_total = total
    if padded_total != total:
        xf = jnp.pad(xf, (0, padded_total - total))
        yf = jnp.pad(yf, (0, padded_total - total))

    rows = padded_total // LANE
    x2 = xf.reshape(rows, LANE)
    y2 = yf.reshape(rows, LANE)

    # ~8 MiB of combined input per grid step; multiple of 32 rows so f32/bf16/
    # int8 sublane packing all divide the block.
    bytes_per_row = LANE * (x2.dtype.itemsize + y2.dtype.itemsize)
    block_rows_max = max(32, ((8 << 20) // bytes_per_row) // 32 * 32)
    # Cap so the grid has >= 2 steps when possible (both v7x TCs get work).
    target = min(block_rows_max, _round_up(pl.cdiv(rows, 2), 32))
    block_rows = target if target <= rows else rows  # tiny inputs: single block
    grid = pl.cdiv(rows, block_rows)

    slab = 32 if block_rows % 32 == 0 else SUBLANE
    kernel = _make_rmse_partial_kernel(block_rows, rows, slab)

    partials = pl.pallas_call(
        kernel,
        out_shape=jax.ShapeDtypeStruct((grid * SUBLANE, LANE), jnp.float32),
        grid_spec=pltpu.PrefetchScalarGridSpec(
            num_scalar_prefetch=0,
            grid=(grid,),
            in_specs=[
                pl.BlockSpec((block_rows, LANE), lambda i: (i, 0)),
                pl.BlockSpec((block_rows, LANE), lambda i: (i, 0)),
            ],
            out_specs=pl.BlockSpec((SUBLANE, LANE), lambda i: (i, 0)),
        ),
        compiler_params=pltpu.CompilerParams(
            dimension_semantics=("parallel",),
            vmem_limit_bytes=32 * 1024 * 1024,
        ),
    )(x2, y2)

    # Single tiny final reduce + sqrt(mean) in plain JAX; mean uses TRUE count.
    mse = jnp.sum(partials, dtype=jnp.float32) / jnp.float32(total)
    loss = jnp.sqrt(mse)

    out_dtype = jnp.promote_types(x.dtype, y.dtype)
    if not jnp.issubdtype(out_dtype, jnp.floating):
        out_dtype = jnp.float32
    return loss.astype(out_dtype)


if __name__ == "__main__":
    key = jax.random.PRNGKey(0)
    kx, ky = jax.random.split(key)
    # Small shapes consistent with a regression loss: predictions vs targets.
    x = jax.random.normal(kx, (2, 4, 16, 16), dtype=jnp.float32)
    y = jax.random.normal(ky, (2, 4, 16, 16), dtype=jnp.float32)

    loss = rmse_loss(x, y)
    jax.block_until_ready(loss)

    # Reference check in plain JAX.
    ref = jnp.sqrt(jnp.mean((x - y) ** 2))
    assert jnp.allclose(loss, ref, rtol=1e-5, atol=1e-6), (loss, ref)

    print("KERNEL_OK")
</pallas_src>

<mosaic_0001>
module attributes {stable_mosaic.version = 11 : i64} {
  func.func @kernel(%arg0: i32, %arg1: memref<16x128xf32, #tpu.memory_space<vmem>>, %arg2: memref<16x128xf32, #tpu.memory_space<vmem>>, %arg3: memref<8x128xf32, #tpu.memory_space<vmem>>) attributes {dimension_semantics = [#tpu.dimension_semantics<parallel>], iteration_bounds = array<i64: 1>, scalar_prefetch = 0 : i64, scratch_operands = 0 : i64, tpu.core_type = #tpu.core_type<tc>, window_params = [{transform_indices = @transform_0, window_bounds = array<i64: 16, 128>}, {transform_indices = @transform_1, window_bounds = array<i64: 16, 128>}, {transform_indices = @transform_2, window_bounds = array<i64: 8, 128>}]} {
    %cst = arith.constant 0.000000e+00 : f32
    %0 = vector.broadcast %cst : f32 to vector<8x128xf32>
    %c0_i32 = arith.constant 0 : i32
    %c2_i32 = arith.constant 2 : i32
    %1 = arith.addi %c0_i32, %c2_i32 : i32
    %c1_i32 = arith.constant 1 : i32
    %2 = scf.for %arg4 = %c0_i32 to %1 step %c1_i32 iter_args(%arg5 = %0) -> (vector<8x128xf32>)  : i32 {
      %c8_i32 = arith.constant 8 : i32
      %4 = arith.muli %arg4, %c8_i32 : i32
      %5 = tpu.assume_multiple %4, 8 : i32
      %6 = arith.index_cast %5 : i32 to index
      %c0_2 = arith.constant 0 : index
      %7 = vector.load %arg1[%6, %c0_2] : memref<16x128xf32, #tpu.memory_space<vmem>>, vector<8x128xf32>
      %8 = arith.index_cast %5 : i32 to index
      %c0_3 = arith.constant 0 : index
      %9 = vector.load %arg2[%8, %c0_3] : memref<16x128xf32, #tpu.memory_space<vmem>>, vector<8x128xf32>
      %10 = arith.subf %7, %9 : vector<8x128xf32>
      %11 = arith.mulf %10, %10 : vector<8x128xf32>
      %12 = vector.shape_cast %11 : vector<8x128xf32> to vector<1x8x128xf32>
      %cst_4 = arith.constant dense<0.000000e+00> : vector<8x128xf32>
      %13 = vector.multi_reduction <add>, %12, %cst_4 [0] : vector<1x8x128xf32> to vector<8x128xf32>
      %14 = arith.addf %arg5, %13 : vector<8x128xf32>
      scf.yield %14 : vector<8x128xf32>
    }
    %c2_i32_0 = arith.constant 2 : i32
    %c0 = arith.constant 0 : index
    %c0_1 = arith.constant 0 : index
    %3 = vector.load %arg3[%c0, %c0_1] : memref<8x128xf32, #tpu.memory_space<vmem>>, vector<8x128xf32>
    tpu.vector_store %arg3[%c0, %c0_1], %2 {strides = array<i32>} : memref<8x128xf32, #tpu.memory_space<vmem>>, vector<8x128xf32>,
    return
  }
  func.func @transform_0(%arg0: i32) -> (i32, i32) {
    %c0_i32 = arith.constant 0 : i32
    %c0_i32_0 = arith.constant 0 : i32
    return %arg0, %c0_i32 : i32, i32
  }
  func.func @transform_1(%arg0: i32) -> (i32, i32) {
    %c0_i32 = arith.constant 0 : i32
    %c0_i32_0 = arith.constant 0 : i32
    return %arg0, %c0_i32 : i32, i32
  }
  func.func @transform_2(%arg0: i32) -> (i32, i32) {
    %c0_i32 = arith.constant 0 : i32
    %c0_i32_0 = arith.constant 0 : i32
    return %arg0, %c0_i32 : i32, i32
  }
}

</mosaic_0001>

<bundles_post_ra>
// kernel: tpu_custom_call.1
= control target key start
LH: loop header
LB: loop body
LE: loop exit
PB: predicated region body
PF: predicated region fallthrough
CT: control target
= control target key end

     0   :  { %7 = vsyncpa [#allocation3], 0  ;;  %s236_s0 = inlined_call_operand.hbm [shape: f32[16,128], index: 0, kind: input, shape index: {}]   ;;  %s237_s1 = inlined_call_operand.hbm [shape: f32[16,128], index: 1, kind: input, shape index: {}]   ;;  %s238_s2 = inlined_call_operand.hbm [shape: f32[8,128], index: 2, kind: output, shape index: {}]  }
   0x1   :  { %8 = vsyncpa [#allocation6], 0 }
   0x2   :  { %9 = vsyncpa [#allocation4], 0  ;;  %s14_s11 = sshll.u32 %s236_s0, 4  ;;  %s207_s12 = smov [#allocation2]   ;;  %s15_s11 = int_to_ptr.hbm [resolvable:$true] %s14_s11 }
   0x3   :  { %s16_s13 = sshll.u32 %s207_s12, 4  ;;  %s27_s16 = sshll.u32 %s237_s1, 4  ;;  %s17_s13 = int_to_ptr.vmem [resolvable:$true] %s16_s13  ;;  %s28_s16 = int_to_ptr.hbm [resolvable:$true] %s27_s16 }
   0x4   :  { %s208_s17 = smov 128   ;;  %s209_s18 = smov 8  }
   0x5   :  { %22 = dma.hbm_to_vmem [thread:$0]  %s15_s11, 256, %s17_s13, [#allocation3], %s208_s17, %s208_s17, %s209_s18  }
   0x6   :  { %s210_s19 = smov [#allocation5]  }
   0x7   :  { %s29_s20 = sshll.u32 %s210_s19, 4  ;;  %s30_s20 = int_to_ptr.vmem [resolvable:$true] %s29_s20 }
   0x8   :  { %35 = dma.hbm_to_vmem [thread:$0]  %s28_s16, 256, %s30_s20, [#allocation6], %s208_s17, %s208_s17, %s209_s18  }
   0x9   :  { %193 = dma.done.wait [#allocation3], 256  }
   0xa   :  { %194 = vsyncadd [#allocation3], 4294967040 }
   0xb   :  { %195 = dma.done.wait [#allocation6], 256  }
   0xc   :  { %196 = vsyncadd [#allocation6], 4294967040  ;;  %v199_v0 = vmov 0.0   ;;  %s203_s0 = smov 0  }
   0xd LB: > { %s91_s21 = sshll.u32 %s205_s0, 3  ;;  %s49_s0 = sadd.s32 1, %s205_s0   ;;  %s205_s0 = sphi %s203_s0, %s49_s0   ;;  %v201_v0 = vphi %v199_v0, %v200_v0  }
   0xe   : > { %s52_s1 = scalar_lea.vmem [#allocation2], %s91_s21  ;;  %s54_s22 = scalar_lea.vmem [#allocation5], %s91_s21 }
   0xf   : > { %v53_v1 = vld [vmem:[%s52_s1] sm:$0xff]  ;;  %p46_p0 = scmp.ge.s32.totalorder %s49_s0, 2  }
  0x10   : > { %v55_v2 = vld [vmem:[%s54_s22] sm:$0xff]  ;;  %s68_s25 = sshll.u32 (%p46_p0), %s238_s2, 4  ;;  %s211_s26 = smov (%p46_p0), [#allocation7]   ;;  %s69_s25 = int_to_ptr.hbm [resolvable:$true] %s68_s25 }
  0x11   : > { %v56_v3 = vsub.f32 %v53_v1, %v55_v2  ;;  %s66_s27 = sshll.u32 (%p46_p0), %s211_s26, 4  ;;  %s67_s27 = int_to_ptr.vmem [resolvable:$true] %s66_s27 }
  0x13   : > { %v57_v4 = vmul.f32 %v56_v3, %v56_v3  ;;  %48 = sbr.rel (!%p46_p0) target bundleno = 13 (0xd), region = 45 }
  0x15   : > { %v59_v5 = vadd.f32 %v201_v0, %v57_v4  }
  0x17   : > { %v200_v0 = vmov %v59_v5   ;;  %60 = vst [vmem:[#allocation7] sm:$0xff] (%p46_p0), %v59_v5 }
  0x18   :  { %71 = dma.vmem_to_hbm [thread:$0]  %s67_s27, 128, %s69_s25, [#allocation4]  }
  0x19   :  { %197 = dma.done.wait [#allocation4], 128  }
  0x1a   :  { %198 = vsyncadd [#allocation4], 4294967168 }
  0x1b   :  { %76 = vsyncpa [#allocation3], 1 }
  0x1c   :  { %77 = vsyncpa [#allocation6], 1 }
  0x1d   :  { %78 = vsyncpa [#allocation4], 1 }

</bundles_post_ra>
